<compile_context>
chip_gen: v7x
topology: tpu7x:2x2x1
jax: 0.10.0
libtpu: 0.0.40
codegen_flags: <defaults>
</compile_context>

<pallas_src>
import jax
import jax.numpy as jnp
from jax.experimental import pallas as pl
from jax.experimental.pallas import tpu as pltpu

LANE = 128  # lane width / padded hidden & output width


def _leaky_relu(z, slope=0.2):
    return jnp.where(z >= 0, z, slope * z)


def mlp_kernel(x_ref, w1_ref, wstack_ref, bias_ref, o_ref):
    # Full 5-layer forward on one batch tile, all activations stay in VMEM/vregs.
    x = x_ref[...]

    h = jnp.dot(x, w1_ref[...], preferred_element_type=jnp.float32) + bias_ref[0:1, :]
    h = jnp.tanh(h)

    h = jnp.dot(h, wstack_ref[0], preferred_element_type=jnp.float32) + bias_ref[1:2, :]
    h = _leaky_relu(h)

    h = jnp.dot(h, wstack_ref[1], preferred_element_type=jnp.float32) + bias_ref[2:3, :]
    h = _leaky_relu(h)

    h = jnp.dot(h, wstack_ref[2], preferred_element_type=jnp.float32) + bias_ref[3:4, :]
    h = _leaky_relu(h)

    y = jnp.dot(h, wstack_ref[3], preferred_element_type=jnp.float32) + bias_ref[4:5, :]
    o_ref[...] = y.astype(o_ref.dtype)


def _pad_last(a, width):
    pad = width - a.shape[-1]
    if pad == 0:
        return a
    return jnp.pad(a, [(0, 0)] * (a.ndim - 1) + [(0, pad)])


def prepare_padded_params(params):
    """Pack the 5 (w, b) pairs (w: [in, out], b: [1, out]) into lane-dense operands."""
    (w1, b1), (w2, b2), (w3, b3), (w4, b4), (w5, b5) = params
    # Layer 1 weight: (i_dim, h_dim) -> (i_dim, 128). Input features stay un-padded
    # so the x DMA bytes do not grow.
    w1p = _pad_last(w1, LANE)
    # Layers 2..5: pad both in (rows) and out (cols) to 128, stack into one slab.
    def pad_sq(w):
        w = _pad_last(w, LANE)
        return jnp.pad(w, ((0, LANE - w.shape[0]), (0, 0)))
    wstack = jnp.stack([pad_sq(w2), pad_sq(w3), pad_sq(w4), pad_sq(w5)], axis=0)
    # Biases: pack all 5 into one (8, 128) tile (rows 5..7 unused padding).
    bias_rows = [_pad_last(b.reshape(1, -1), LANE) for b in (b1, b2, b3, b4, b5)]
    bias_pack = jnp.concatenate(bias_rows + [jnp.zeros((3, LANE), jnp.float32)], axis=0)
    return w1p, wstack, bias_pack


def neural_network5_forward(x, params, *, batch_tile=None):
    """Pallas forward for NeuralNetwork5."""
    B, i_dim = x.shape
    y_dim = params[-1][0].shape[1]

    w1p, wstack, bias_pack = prepare_padded_params(params)
    assert w1p.shape[0] == i_dim

    if batch_tile is None:
        batch_tile = B if B <= 512 else 512
    assert B % batch_tile == 0, "batch must be divisible by batch_tile"

    grid_spec = pltpu.PrefetchScalarGridSpec(
        num_scalar_prefetch=0,
        grid=(B // batch_tile,),
        in_specs=[
            pl.BlockSpec((batch_tile, i_dim), lambda i: (i, 0)),        # x tile
            pl.BlockSpec(w1p.shape, lambda i: (0, 0)),                  # w1 (resident)
            pl.BlockSpec(wstack.shape, lambda i: (0, 0, 0)),            # w2..w5 slab
            pl.BlockSpec(bias_pack.shape, lambda i: (0, 0)),            # packed biases
        ],
        out_specs=pl.BlockSpec((batch_tile, LANE), lambda i: (i, 0)),   # lane-dense out
    )

    y_padded = pl.pallas_call(
        mlp_kernel,
        out_shape=jax.ShapeDtypeStruct((B, LANE), x.dtype),
        grid_spec=grid_spec,
        compiler_params=pltpu.CompilerParams(
            dimension_semantics=("parallel",)),
    )(x, w1p, wstack, bias_pack)

    return y_padded[:, :y_dim]


def init_params(key, i_dim, h_dim, y_dim):
    """Deterministic synthetic init (normal(0, 0.02) weights, zero biases);
    weights stored as [in, out]."""
    dims = [(i_dim, h_dim), (h_dim, h_dim), (h_dim, h_dim), (h_dim, h_dim), (h_dim, y_dim)]
    params = []
    for d_in, d_out in dims:
        key, wk = jax.random.split(key)
        w = (0.02 * jax.random.normal(wk, (d_in, d_out))).astype(jnp.float32)
        b = jnp.zeros((1, d_out), jnp.float32)
        params.append((w, b))
    return params


def reference_forward(x, params):
    (w1, b1), (w2, b2), (w3, b3), (w4, b4), (w5, b5) = params
    h = jnp.tanh(x @ w1 + b1)
    h = _leaky_relu(h @ w2 + b2)
    h = _leaky_relu(h @ w3 + b3)
    h = _leaky_relu(h @ w4 + b4)
    return h @ w5 + b5


if __name__ == "__main__":
    # Shapes implied by the module (vision=False path): i_dim = t_dim * m_dim.
    t_dim, m_dim = 4, 8
    i_dim = t_dim * m_dim        # 32
    h_dim = 32
    y_dim = 8
    batch = 64                   # small but sublane-aligned; one grid step

    key = jax.random.PRNGKey(0)
    key, xk = jax.random.split(key)
    x = jax.random.normal(xk, (batch, i_dim), dtype=jnp.float32)
    params = init_params(key, i_dim, h_dim, y_dim)

    y = neural_network5_forward(x, params)
    y = jax.block_until_ready(y)

    y_ref = reference_forward(x, params)
    assert y.shape == (batch, y_dim)
    assert jnp.allclose(y, y_ref, atol=1e-5, rtol=1e-5)
    print("KERNEL_OK")
</pallas_src>

<mosaic_0001>
module attributes {stable_mosaic.version = 11 : i64} {
  func.func @mlp_kernel(%arg0: i32, %arg1: memref<64x32xf32, #tpu.memory_space<vmem>>, %arg2: memref<32x128xf32, #tpu.memory_space<vmem>>, %arg3: memref<4x128x128xf32, #tpu.memory_space<vmem>>, %arg4: memref<8x128xf32, #tpu.memory_space<vmem>>, %arg5: memref<64x128xf32, #tpu.memory_space<vmem>>) attributes {dimension_semantics = [#tpu.dimension_semantics<parallel>], iteration_bounds = array<i64: 1>, scalar_prefetch = 0 : i64, scratch_operands = 0 : i64, tpu.core_type = #tpu.core_type<tc>, window_params = [{transform_indices = @transform_0, window_bounds = array<i64: 64, 32>}, {pipeline_mode = #tpu.pipeline_mode<synchronous>, transform_indices = @transform_1, window_bounds = array<i64: 32, 128>}, {pipeline_mode = #tpu.pipeline_mode<synchronous>, transform_indices = @transform_2, window_bounds = array<i64: 4, 128, 128>}, {pipeline_mode = #tpu.pipeline_mode<synchronous>, transform_indices = @transform_3, window_bounds = array<i64: 8, 128>}, {transform_indices = @transform_4, window_bounds = array<i64: 64, 128>}]} {
    %c0 = arith.constant 0 : index
    %c0_0 = arith.constant 0 : index
    %0 = vector.load %arg1[%c0, %c0_0] : memref<64x32xf32, #tpu.memory_space<vmem>>, vector<64x32xf32>
    %c0_1 = arith.constant 0 : index
    %c0_2 = arith.constant 0 : index
    %1 = vector.load %arg2[%c0_1, %c0_2] : memref<32x128xf32, #tpu.memory_space<vmem>>, vector<32x128xf32>
    %cst = arith.constant dense<0.000000e+00> : vector<64x128xf32>
    %2 = tpu.matmul %0, %1, %cst {dimension_numbers = #tpu.dot_dimension_numbers<[1], [0], [0], [1], [0, 0, 1, 1], [], []>} : vector<64x32xf32>, vector<32x128xf32>, vector<64x128xf32> -> vector<64x128xf32>
    %c0_3 = arith.constant 0 : index
    %c0_4 = arith.constant 0 : index
    %3 = vector.load %arg4[%c0_3, %c0_4] : memref<8x128xf32, #tpu.memory_space<vmem>>, vector<1x128xf32>
    %4 = vector.broadcast %3 : vector<1x128xf32> to vector<64x128xf32>
    %5 = arith.addf %2, %4 : vector<64x128xf32>
    %6 = math.tanh %5 : vector<64x128xf32>
    %c0_5 = arith.constant 0 : index
    %c0_6 = arith.constant 0 : index
    %c0_7 = arith.constant 0 : index
    %7 = vector.load %arg3[%c0_5, %c0_6, %c0_7] : memref<4x128x128xf32, #tpu.memory_space<vmem>>, vector<1x128x128xf32>
    %8 = vector.shape_cast %7 : vector<1x128x128xf32> to vector<128x128xf32>
    %cst_8 = arith.constant dense<0.000000e+00> : vector<64x128xf32>
    %9 = tpu.matmul %6, %8, %cst_8 {dimension_numbers = #tpu.dot_dimension_numbers<[1], [0], [0], [1], [0, 0, 1, 1], [], []>} : vector<64x128xf32>, vector<128x128xf32>, vector<64x128xf32> -> vector<64x128xf32>
    %c1 = arith.constant 1 : index
    %c0_9 = arith.constant 0 : index
    %10 = vector.load %arg4[%c1, %c0_9] : memref<8x128xf32, #tpu.memory_space<vmem>>, vector<1x128xf32>
    %11 = vector.broadcast %10 : vector<1x128xf32> to vector<64x128xf32>
    %12 = arith.addf %9, %11 : vector<64x128xf32>
    %cst_10 = arith.constant 0.000000e+00 : f32
    %13 = vector.broadcast %cst_10 : f32 to vector<64x128xf32>
    %14 = arith.cmpf oge, %12, %13 : vector<64x128xf32>
    %cst_11 = arith.constant 2.000000e-01 : f32
    %15 = vector.broadcast %cst_11 : f32 to vector<64x128xf32>
    %16 = arith.mulf %15, %12 : vector<64x128xf32>
    %17 = arith.select %14, %12, %16 : vector<64x128xi1>, vector<64x128xf32>
    %c1_12 = arith.constant 1 : index
    %c0_13 = arith.constant 0 : index
    %c0_14 = arith.constant 0 : index
    %18 = vector.load %arg3[%c1_12, %c0_13, %c0_14] : memref<4x128x128xf32, #tpu.memory_space<vmem>>, vector<1x128x128xf32>
    %19 = vector.shape_cast %18 : vector<1x128x128xf32> to vector<128x128xf32>
    %cst_15 = arith.constant dense<0.000000e+00> : vector<64x128xf32>
    %20 = tpu.matmul %17, %19, %cst_15 {dimension_numbers = #tpu.dot_dimension_numbers<[1], [0], [0], [1], [0, 0, 1, 1], [], []>} : vector<64x128xf32>, vector<128x128xf32>, vector<64x128xf32> -> vector<64x128xf32>
    %c2 = arith.constant 2 : index
    %c0_16 = arith.constant 0 : index
    %21 = vector.load %arg4[%c2, %c0_16] : memref<8x128xf32, #tpu.memory_space<vmem>>, vector<1x128xf32>
    %22 = vector.broadcast %21 : vector<1x128xf32> to vector<64x128xf32>
    %23 = arith.addf %20, %22 : vector<64x128xf32>
    %cst_17 = arith.constant 0.000000e+00 : f32
    %24 = vector.broadcast %cst_17 : f32 to vector<64x128xf32>
    %25 = arith.cmpf oge, %23, %24 : vector<64x128xf32>
    %cst_18 = arith.constant 2.000000e-01 : f32
    %26 = vector.broadcast %cst_18 : f32 to vector<64x128xf32>
    %27 = arith.mulf %26, %23 : vector<64x128xf32>
    %28 = arith.select %25, %23, %27 : vector<64x128xi1>, vector<64x128xf32>
    %c2_19 = arith.constant 2 : index
    %c0_20 = arith.constant 0 : index
    %c0_21 = arith.constant 0 : index
    %29 = vector.load %arg3[%c2_19, %c0_20, %c0_21] : memref<4x128x128xf32, #tpu.memory_space<vmem>>, vector<1x128x128xf32>
    %30 = vector.shape_cast %29 : vector<1x128x128xf32> to vector<128x128xf32>
    %cst_22 = arith.constant dense<0.000000e+00> : vector<64x128xf32>
    %31 = tpu.matmul %28, %30, %cst_22 {dimension_numbers = #tpu.dot_dimension_numbers<[1], [0], [0], [1], [0, 0, 1, 1], [], []>} : vector<64x128xf32>, vector<128x128xf32>, vector<64x128xf32> -> vector<64x128xf32>
    %c3 = arith.constant 3 : index
    %c0_23 = arith.constant 0 : index
    %32 = vector.load %arg4[%c3, %c0_23] : memref<8x128xf32, #tpu.memory_space<vmem>>, vector<1x128xf32>
    %33 = vector.broadcast %32 : vector<1x128xf32> to vector<64x128xf32>
    %34 = arith.addf %31, %33 : vector<64x128xf32>
    %cst_24 = arith.constant 0.000000e+00 : f32
    %35 = vector.broadcast %cst_24 : f32 to vector<64x128xf32>
    %36 = arith.cmpf oge, %34, %35 : vector<64x128xf32>
    %cst_25 = arith.constant 2.000000e-01 : f32
    %37 = vector.broadcast %cst_25 : f32 to vector<64x128xf32>
    %38 = arith.mulf %37, %34 : vector<64x128xf32>
    %39 = arith.select %36, %34, %38 : vector<64x128xi1>, vector<64x128xf32>
    %c3_26 = arith.constant 3 : index
    %c0_27 = arith.constant 0 : index
    %c0_28 = arith.constant 0 : index
    %40 = vector.load %arg3[%c3_26, %c0_27, %c0_28] : memref<4x128x128xf32, #tpu.memory_space<vmem>>, vector<1x128x128xf32>
    %41 = vector.shape_cast %40 : vector<1x128x128xf32> to vector<128x128xf32>
    %cst_29 = arith.constant dense<0.000000e+00> : vector<64x128xf32>
    %42 = tpu.matmul %39, %41, %cst_29 {dimension_numbers = #tpu.dot_dimension_numbers<[1], [0], [0], [1], [0, 0, 1, 1], [], []>} : vector<64x128xf32>, vector<128x128xf32>, vector<64x128xf32> -> vector<64x128xf32>
    %c4 = arith.constant 4 : index
    %c0_30 = arith.constant 0 : index
    %43 = vector.load %arg4[%c4, %c0_30] : memref<8x128xf32, #tpu.memory_space<vmem>>, vector<1x128xf32>
    %44 = vector.broadcast %43 : vector<1x128xf32> to vector<64x128xf32>
    %45 = arith.addf %42, %44 : vector<64x128xf32>
    %c0_31 = arith.constant 0 : index
    %c0_32 = arith.constant 0 : index
    %46 = vector.load %arg5[%c0_31, %c0_32] : memref<64x128xf32, #tpu.memory_space<vmem>>, vector<64x128xf32>
    tpu.vector_store %arg5[%c0_31, %c0_32], %45 {strides = array<i32>} : memref<64x128xf32, #tpu.memory_space<vmem>>, vector<64x128xf32>,
    return
  }
  func.func @transform_0(%arg0: i32) -> (i32, i32) {
    %c0_i32 = arith.constant 0 : i32
    %c0_i32_0 = arith.constant 0 : i32
    return %arg0, %c0_i32 : i32, i32
  }
  func.func @transform_1(%arg0: i32) -> (i32, i32) {
    %c0_i32 = arith.constant 0 : i32
    %c0_i32_0 = arith.constant 0 : i32
    %c0_i32_1 = arith.constant 0 : i32
    return %c0_i32, %c0_i32_0 : i32, i32
  }
  func.func @transform_2(%arg0: i32) -> (i32, i32, i32) {
    %c0_i32 = arith.constant 0 : i32
    %c0_i32_0 = arith.constant 0 : i32
    %c0_i32_1 = arith.constant 0 : i32
    %c0_i32_2 = arith.constant 0 : i32
    return %c0_i32, %c0_i32_0, %c0_i32_1 : i32, i32, i32
  }
  func.func @transform_3(%arg0: i32) -> (i32, i32) {
    %c0_i32 = arith.constant 0 : i32
    %c0_i32_0 = arith.constant 0 : i32
    %c0_i32_1 = arith.constant 0 : i32
    return %c0_i32, %c0_i32_0 : i32, i32
  }
  func.func @transform_4(%arg0: i32) -> (i32, i32) {
    %c0_i32 = arith.constant 0 : i32
    %c0_i32_0 = arith.constant 0 : i32
    return %arg0, %c0_i32 : i32, i32
  }
}

</mosaic_0001>

<bundles_post_ra>
// kernel: tpu_custom_call.1
= control target key start
LH: loop header
LB: loop body
LE: loop exit
PB: predicated region body
PF: predicated region fallthrough
CT: control target
= control target key end

     0   :  { %9 = vsyncpa [#allocation3], 0  ;;  %s1430_s0 = inlined_call_operand.vmem [shape: f32[64,32], index: 0, kind: input, shape index: {}]   ;;  %s1431_s1 = inlined_call_operand.vmem [shape: f32[32,128], index: 1, kind: input, shape index: {}]   ;;  %s1432_s2 = inlined_call_operand.hbm [shape: f32[4,128,128], index: 2, kind: input, shape index: {}]   ;;  %s1433_s3 = inlined_call_operand.vmem [shape: f32[8,128], index: 3, kind: input, shape index: {}]   ;;  %s1434_s4 = inlined_call_operand.hbm [shape: f32[64,128], index: 4, kind: output, shape index: {}]  }
   0x1   :  { %10 = vsyncpa [#allocation4], 0  ;;  %s1312_s15 = smov [#allocation2]   ;;  %s1264_s19 = scalar_lea.hbm %s1432_s2, 8192 }
   0x2   :  { %s20_s16 = sshll.u32 %s1312_s15, 4  ;;  %p1265_p0 = scmp.ne.s32.totalorder %s1432_s2, %s1264_s19  ;;  %s21_s16 = int_to_ptr.vmem [resolvable:$true] %s20_s16 }
   0x3   :  { %p1268_p1 = scmp.lt.u32.totalorder %s1264_s19, %s1432_s2 }
   0x5   :  { %p1270_p2 = pnand %p1268_p1, %p1265_p0 }
   0x7   :  { %1273 = shalt.err (!%p1270_p2)
}
   0x8   :  { %s1274_s24 = scalar_lea.vmem %s21_s16, 8192  ;;  %p1279_p4 = scmp.lt.s32.totalorder %s21_s16, %s21_s16 }
   0x9   :  { %p1275_p3 = scmp.ne.s32.totalorder %s21_s16, %s1274_s24  ;;  %p1280_p5 = scmp.lt.s32.totalorder %s1274_s24, %s1274_s24 }
   0xb   :  { %p1281_p6 = por %p1280_p5, %p1279_p4 }
   0xd   :  { %p1282_p7 = pnand %p1281_p6, %p1275_p3 }
   0xf   :  { %1285 = shalt.err (!%p1282_p7)
}
  0x10   :  { %s1313_s25 = smov 128   ;;  %s1314_s26 = smov 8  }
  0x11   :  { %26 = dma.hbm_to_vmem [thread:$0]  %s1432_s2, 8192, %s21_s16, [#allocation3], %s1313_s25, %s1313_s25, %s1314_s26  }
  0x12   :  { %1308 = dma.done.wait [#allocation3], 8192  }
  0x13   :  { %1309 = vsyncadd [#allocation3], 4294959104  ;;  %vm49_vm0 = vcmask 261120   ;;  %v40_v0 = vld [vmem:[%s1431_s1] sm:$0xff]  ;;  %v41_v1 = vld [vmem:[%s1431_s1 + $0x8] sm:$0xff]  ;;  %s1315_s10 = smov [#allocation5]  }
  0x14   :  { %v42_v2 = vld [vmem:[%s1431_s1 + $0x10] sm:$0xff]  ;;  %v1108_v3 = vpack.c.bf16 %v41_v1, %v40_v0  ;;  %v43_v4 = vld [vmem:[%s1431_s1 + $0x18] sm:$0xff]  ;;  %v32_v5 = vld [vmem:[%s1430_s0] sm:$0xff]  ;;  %s779_s2 = sshll.u32 %s1315_s10, 4  ;;  %s780_s2 = int_to_ptr.vmem [resolvable:$true] %s779_s2 }
  0x15   :  { %v1112_v6 = vpack.c.bf16 %v43_v4, %v42_v2  ;;  %920 = vmatprep.mubr.msk.f32.mxu0 %vm49_vm0, %v32_v5  ;;  %v187_v7 = vld [vmem:[#allocation2] sm:$0xff]  ;;  %v188_v8 = vld [vmem:[#allocation2 + $0x8] sm:$0xff]  ;;  %v189_v9 = vld [vmem:[#allocation2 + $0x10] sm:$0xff]  ;;  %p1291_p9 = scmp.lt.s32.totalorder %s780_s2, %s780_s2 }
  0x16   :  { %1109 = vmatprep.subr.bf16.mxu0 %v1108_v3  ;;  %v1116_v10 = vpack.c.bf16 %v188_v8, %v187_v7  ;;  %v190_v11 = vld [vmem:[#allocation2 + $0x18] sm:$0xff]  ;;  %v191_v13 = vld [vmem:[#allocation2 + $0x20] sm:$0xff]  ;;  %v192_v14 = vld [vmem:[#allocation2 + $0x28] sm:$0xff] }
  0x17   :  { %1111 = vmatpush3.bf16.msra.mxu0 %v1108_v3  ;;  %v1120_v12 = vpack.c.bf16 %v190_v11, %v189_v9  ;;  %v33_v15 = vld [vmem:[%s1430_s0 + $0x8] sm:$0xff]  ;;  %v34_v16 = vld [vmem:[%s1430_s0 + $0x10] sm:$0xff]  ;;  %v1124_v17 = vpack.c.bf16 %v192_v14, %v191_v13  ;;  %v194_v19 = vld [vmem:[#allocation2 + $0x38] sm:$0xff] }
  0x18   :  { %1113 = vmatprep.subr.bf16.mxu0 %v1112_v6  ;;  %1117 = vmatprep.subr.bf16.mxu1 %v1116_v10  ;;  %v193_v18 = vld [vmem:[#allocation2 + $0x30] sm:$0xff]  ;;  %v35_v20 = vld [vmem:[%s1430_s0 + $0x18] sm:$0xff]  ;;  %v36_v21 = vld [vmem:[%s1430_s0 + $0x20] sm:$0xff] }
  0x19   :  { %1119 = vmatpush3.bf16.msra.mxu1 %v1116_v10  ;;  %v1128_v22 = vpack.c.bf16 %v194_v19, %v193_v18  ;;  %v37_v23 = vld [vmem:[%s1430_s0 + $0x28] sm:$0xff]  ;;  %v38_v24 = vld [vmem:[%s1430_s0 + $0x30] sm:$0xff]  ;;  %v39_v25 = vld [vmem:[%s1430_s0 + $0x38] sm:$0xff] }
  0x1a   :  { %1121 = vmatprep.subr.bf16.mxu1 %v1120_v12  ;;  %v195_v26 = vld [vmem:[#allocation2 + $0x40] sm:$0xff]  ;;  %v196_v27 = vld [vmem:[#allocation2 + $0x48] sm:$0xff]  ;;  %v197_v29 = vld [vmem:[#allocation2 + $0x50] sm:$0xff] }
  0x1b   :  { %1115 = vmatpush3.bf16.msra.mxu0 %v1112_v6  ;;  %v1132_v28 = vpack.c.bf16 %v196_v27, %v195_v26  ;;  %v198_v30 = vld [vmem:[#allocation2 + $0x58] sm:$0xff]  ;;  %v199_v32 = vld [vmem:[#allocation2 + $0x60] sm:$0xff]  ;;  %v200_v33 = vld [vmem:[#allocation2 + $0x68] sm:$0xff] }
  0x1c   :  { %v1136_v31 = vpack.c.bf16 %v198_v30, %v197_v29  ;;  %v1140_v34 = vpack.c.bf16 %v200_v33, %v199_v32  ;;  %v201_v35 = vld [vmem:[#allocation2 + $0x70] sm:$0xff]  ;;  %v202_v36 = vld [vmem:[#allocation2 + $0x78] sm:$0xff]  ;;  %v338_v38 = vld [vmem:[#allocation2 + $0x80] sm:$0xff] }
  0x1d   :  { %1123 = vmatpush3.bf16.msra.mxu1 %v1120_v12  ;;  %v1144_v37 = vpack.c.bf16 %v202_v36, %v201_v35  ;;  %v339_v39 = vld [vmem:[#allocation2 + $0x88] sm:$0xff]  ;;  %v340_v40 = vld [vmem:[#allocation2 + $0x90] sm:$0xff]  ;;  %v341_v42 = vld [vmem:[#allocation2 + $0x98] sm:$0xff] }
  0x1e   :  { %921 = vmatmul.mubr.msk.f32.vlgmr.msra.gmra.mrb[0].mxu0 %vm49_vm0, %v33_v15  ;;  %1125 = vmatprep.subr.bf16.mxu1 %v1124_v17  ;;  %v1148_v41 = vpack.c.bf16 %v339_v39, %v338_v38  ;;  %v1152_v43 = vpack.c.bf16 %v341_v42, %v340_v40  ;;  %v342_v44 = vld [vmem:[#allocation2 + $0xa0] sm:$0xff]  ;;  %v343_v45 = vld [vmem:[#allocation2 + $0xa8] sm:$0xff]  ;;  %v344_v47 = vld [vmem:[#allocation2 + $0xb0] sm:$0xff] }
  0x1f   :  { %923 = vmatprep.mubr.msk.f32.mxu0 %vm49_vm0, %v34_v16  ;;  %v1156_v46 = vpack.c.bf16 %v343_v45, %v342_v44  ;;  %v345_v48 = vld [vmem:[#allocation2 + $0xb8] sm:$0xff]  ;;  %v346_v50 = vld [vmem:[#allocation2 + $0xc0] sm:$0xff]  ;;  %v347_v51 = vld [vmem:[#allocation2 + $0xc8] sm:$0xff] }
  0x20   :  { %1149 = vmatprep.subr.bf16.mxu0 %v1148_v41  ;;  %v1160_v49 = vpack.c.bf16 %v345_v48, %v344_v47  ;;  %v1164_v52 = vpack.c.bf16 %v347_v51, %v346_v50  ;;  %v348_v53 = vld [vmem:[#allocation2 + $0xd0] sm:$0xff]  ;;  %v349_v54 = vld [vmem:[#allocation2 + $0xd8] sm:$0xff]  ;;  %v791_v56 = vld [vmem:[%s1433_s3] ss:$0 sm:$0xff] }
  0x21   :  { %1127 = vmatpush3.bf16.msra.mxu1 %v1124_v17  ;;  %1151 = vmatpush3.bf16.msra.mxu0 %v1148_v41  ;;  %v1168_v55 = vpack.c.bf16 %v349_v54, %v348_v53  ;;  %v350_v17 = vld [vmem:[#allocation2 + $0xe0] sm:$0xff]  ;;  %v351_v18 = vld [vmem:[#allocation2 + $0xe8] sm:$0xff]  ;;  %v492_v27 = vld [vmem:[#allocation2 + $0x118] sm:$0xff] }
  0x22   :  { %924 = vmatmul.mubr.msk.f32.gmra.mrb[2].mxu0 %vm49_vm0, %v35_v20  ;;  %1129 = vmatprep.subr.bf16.mxu1 %v1128_v22  ;;  %v1172_v19 = vpack.c.bf16 %v351_v18, %v350_v17  ;;  %v352_v20 = vld [vmem:[#allocation2 + $0xf0] sm:$0xff]  ;;  %v493_v29 = vld [vmem:[#allocation2 + $0x120] sm:$0xff]  ;;  %v494_v30 = vld [vmem:[#allocation2 + $0x128] sm:$0xff] }
  0x23   :  { %926 = vmatprep.mubr.msk.f32.mxu0 %vm49_vm0, %v36_v21  ;;  %1153 = vmatprep.subr.bf16.mxu0 %v1152_v43  ;;  %v353_v21 = vld [vmem:[#allocation2 + $0xf8] sm:$0xff]  ;;  %v495_v32 = vld [vmem:[#allocation2 + $0x130] sm:$0xff]  ;;  %v497_v35 = vld [vmem:[#allocation2 + $0x140] sm:$0xff] }
  0x24   :  { %v496_v33 = vld [vmem:[#allocation2 + $0x138] sm:$0xff]  ;;  %v498_v36 = vld [vmem:[#allocation2 + $0x148] sm:$0xff]  ;;  %v499_v38 = vld [vmem:[#allocation2 + $0x150] sm:$0xff] }
  0x25   :  { %1131 = vmatpush3.bf16.msra.mxu1 %v1128_v22  ;;  %1155 = vmatpush3.bf16.msra.mxu0 %v1152_v43  ;;  %v1176_v22 = vpack.c.bf16 %v353_v21, %v352_v20  ;;  %v500_v39 = vld [vmem:[#allocation2 + $0x158] sm:$0xff]  ;;  %v800_v41 = vld [vmem:[%s1433_s3 + $0x1] ss:$0 sm:$0xff]  ;;  %v641_v17 = vld [vmem:[#allocation2 + $0x188] sm:$0xff] }
  0x26   :  { %927 = vmatmul.mubr.msk.f32.gmra.mrb[4].mxu0 %vm49_vm0, %v37_v23  ;;  %1133 = vmatprep.subr.bf16.mxu1 %v1132_v28  ;;  %v489_v23 = vld [vmem:[#allocation2 + $0x100] sm:$0xff]  ;;  %v1200_v40 = vpack.c.bf16 %v500_v39, %v499_v38  ;;  %v642_v18 = vld [vmem:[#allocation2 + $0x190] sm:$0xff]  ;;  %v643_v20 = vld [vmem:[#allocation2 + $0x198] sm:$0xff] }
  0x27   :  { %929 = vmatprep.mubr.msk.f32.mxu0 %vm49_vm0, %v38_v24  ;;  %1157 = vmatprep.subr.bf16.mxu0 %v1156_v46  ;;  %v490_v24 = vld [vmem:[#allocation2 + $0x108] sm:$0xff]  ;;  %v1216_v21 = vpack.c.bf16 %v643_v20, %v642_v18 }
  0x28   :  { %v1180_v26 = vpack.c.bf16 %v490_v24, %v489_v23  ;;  %v645_v23 = vld [vmem:[#allocation2 + $0x1a8] sm:$0xff] }
  0x29   :  { %1135 = vmatpush3.bf16.msra.mxu1 %v1132_v28  ;;  %1159 = vmatpush3.bf16.msra.mxu0 %v1156_v46 }
  0x2a   :  { %930 = vmatmul.mubr.msk.f32.gmra.mrb[6].mxu0 %vm49_vm0, %v39_v25  ;;  %1137 = vmatprep.subr.bf16.mxu1 %v1136_v31  ;;  %v491_v25 = vld [vmem:[#allocation2 + $0x110] sm:$0xff] }
  0x2b   :  { %1161 = vmatprep.subr.bf16.mxu0 %v1160_v49  ;;  %v1184_v28 = vpack.c.bf16 %v492_v27, %v491_v25  ;;  %v646_v25 = vld [vmem:[#allocation2 + $0x1b0] sm:$0xff] }
  0x2d   :  { %1139 = vmatpush3.bf16.msra.mxu1 %v1136_v31  ;;  %1163 = vmatpush3.bf16.msra.mxu0 %v1160_v49  ;;  %v1188_v31 = vpack.c.bf16 %v494_v30, %v493_v29  ;;  %v649_v29 = vld [vmem:[#allocation2 + $0x1c8] sm:$0xff] }
  0x2e   :  { %1141 = vmatprep.subr.bf16.mxu1 %v1140_v34  ;;  %1165 = vmatprep.subr.bf16.mxu0 %v1164_v52 }
  0x31   :  { %1143 = vmatpush3.bf16.msra.mxu1 %v1140_v34  ;;  %1167 = vmatpush3.bf16.msra.mxu0 %v1164_v52  ;;  %v1192_v34 = vpack.c.bf16 %v496_v33, %v495_v32  ;;  %v651_v32 = vld [vmem:[#allocation2 + $0x1d8] sm:$0xff] }
  0x32   :  { %1145 = vmatprep.subr.bf16.mxu1 %v1144_v37  ;;  %1169 = vmatprep.subr.bf16.mxu0 %v1168_v55 }
  0x35   :  { %1147 = vmatpush3.bf16.msra.mxu1 %v1144_v37  ;;  %1171 = vmatpush3.bf16.msra.mxu0 %v1168_v55  ;;  %v1196_v37 = vpack.c.bf16 %v498_v36, %v497_v35 }
  0x36   :  { %1173 = vmatprep.subr.bf16.mxu0 %v1172_v19  ;;  %1181 = vmatprep.subr.bf16.mxu1 %v1180_v26 }
  0x39   :  { %1175 = vmatpush3.bf16.msra.mxu0 %v1172_v19 }
  0x3a   :  { %1177 = vmatprep.subr.bf16.mxu0 %v1176_v22 }
  0x3d   :  { %1179 = vmatpush3.bf16.msra.mxu0 %v1176_v22  ;;  %v644_v22 = vld [vmem:[#allocation2 + $0x1a0] sm:$0xff] }
  0x3e   :  { %v1220_v24 = vpack.c.bf16 %v645_v23, %v644_v22 }
  0xf1   :  { %v922_v57 = vpop.f32.mrb[0].mxu0 }
  0xf2   :  { %v146_v58 = vadd.f32 %v922_v57, %v791_v56  ;;  %v140_v59 = vpop.f32.mrb[1].mxu0 }
  0xf3   :  { %v141_v60 = vadd.f32 %v791_v56, %v140_v59 }
  0xf5   :  { %1248 = vtanh.f32 %v141_v60  ;;  %v925_v61 = vpop.f32.mrb[2].mxu0 }
  0xf6   :  { %1250 = vtanh.f32 %v146_v58  ;;  %v156_v62 = vadd.f32 %v925_v61, %v791_v56  ;;  %v150_v63 = vpop.f32.mrb[3].mxu0 }
  0xf7   :  { %v151_v0 = vadd.f32 %v791_v56, %v150_v63 }
  0xf9   :  { %1252 = vtanh.f32 %v151_v0  ;;  %v928_v1 = vpop.f32.mrb[4].mxu0 }
  0xfa   :  { %1254 = vtanh.f32 %v156_v62  ;;  %v166_v2 = vadd.f32 %v928_v1, %v791_v56  ;;  %v160_v3 = vpop.f32.mrb[5].mxu0 }
  0xfb   :  { %v161_v4 = vadd.f32 %v791_v56, %v160_v3 }
  0xfd   :  { %1256 = vtanh.f32 %v161_v4  ;;  %v931_v5 = vpop.f32.mrb[6].mxu0 }
  0xfe   :  { %1258 = vtanh.f32 %v166_v2  ;;  %v176_v6 = vadd.f32 %v931_v5, %v791_v56  ;;  %v170_v7 = vpop.f32.mrb[7].mxu0 }
  0xff   :  { %v1249_v8 = vpop.eup %1248  ;;  %v171_v9 = vadd.f32 %v791_v56, %v170_v7 }
 0x100   :  { %v1251_v10 = vpop.eup %1250  ;;  %964 = vmatprep.mubr.f32.mxu1 %v1249_v8 }
 0x101   :  { %1260 = vtanh.f32 %v171_v9  ;;  %965 = vmatmul.mubr.f32.vlgmr.msra.gmra.mrb[0].mxu1 %v1251_v10  ;;  %v501_v10 = vld [vmem:[#allocation2 + $0x160] sm:$0xff] }
 0x102   :  { %1262 = vtanh.f32 %v176_v6  ;;  %1183 = vmatpush3.bf16.msra.mxu1 %v1180_v26  ;;  %v647_v26 = vld [vmem:[#allocation2 + $0x1b8] sm:$0xff] }
 0x103   :  { %v1253_v11 = vpop.eup %1252  ;;  %1185 = vmatprep.subr.bf16.mxu1 %v1184_v28  ;;  %v1224_v27 = vpack.c.bf16 %v647_v26, %v646_v25 }
 0x104   :  { %v1255_v12 = vpop.eup %1254  ;;  %967 = vmatprep.mubr.f32.mxu1 %v1253_v11  ;;  %v502_v11 = vld [vmem:[#allocation2 + $0x168] sm:$0xff] }
 0x105   :  { %968 = vmatmul.mubr.f32.gmra.mrb[2].mxu1 %v1255_v12  ;;  %v1204_v12 = vpack.c.bf16 %v502_v11, %v501_v10 }
 0x106   :  { %1187 = vmatpush3.bf16.msra.mxu1 %v1184_v28  ;;  %v648_v28 = vld [vmem:[#allocation2 + $0x1c0] sm:$0xff] }
 0x107   :  { %v1257_v13 = vpop.eup %1256  ;;  %1189 = vmatprep.subr.bf16.mxu1 %v1188_v31  ;;  %v1228_v30 = vpack.c.bf16 %v649_v29, %v648_v28 }
 0x108   :  { %v1259_v14 = vpop.eup %1258  ;;  %970 = vmatprep.mubr.f32.mxu1 %v1257_v13  ;;  %v503_v13 = vld [vmem:[#allocation2 + $0x170] sm:$0xff] }
 0x109   :  { %971 = vmatmul.mubr.f32.gmra.mrb[4].mxu1 %v1259_v14  ;;  %v504_v14 = vld [vmem:[#allocation2 + $0x178] sm:$0xff] }
 0x10a   :  { %1191 = vmatpush3.bf16.msra.mxu1 %v1188_v31  ;;  %v650_v31 = vld [vmem:[#allocation2 + $0x1d0] sm:$0xff] }
 0x10b   :  { %v1261_v15 = vpop.eup %1260  ;;  %1193 = vmatprep.subr.bf16.mxu1 %v1192_v34  ;;  %v1232_v33 = vpack.c.bf16 %v651_v32, %v650_v31 }
 0x10c   :  { %v1263_v16 = vpop.eup %1262  ;;  %973 = vmatprep.mubr.f32.mxu1 %v1261_v15  ;;  %v1208_v15 = vpack.c.bf16 %v504_v14, %v503_v13 }
 0x10d   :  { %974 = vmatmul.mubr.f32.gmra.mrb[6].mxu1 %v1263_v16  ;;  %v640_v16 = vld [vmem:[#allocation2 + $0x180] sm:$0xff] }
 0x10e   :  { %1195 = vmatpush3.bf16.msra.mxu1 %v1192_v34  ;;  %v1212_v19 = vpack.c.bf16 %v641_v17, %v640_v16  ;;  %v801_v34 = vld [vmem:[%s1433_s3 + $0x2] ss:$0 sm:$0xff] }
 0x10f   :  { %1197 = vmatprep.subr.bf16.mxu1 %v1196_v37 }
 0x110   :  { %1213 = vmatprep.subr.bf16.mxu0 %v1212_v19 }
 0x112   :  { %1199 = vmatpush3.bf16.msra.mxu1 %v1196_v37 }
 0x113   :  { %1201 = vmatprep.subr.bf16.mxu1 %v1200_v40 }
 0x116   :  { %1203 = vmatpush3.bf16.msra.mxu1 %v1200_v40 }
 0x117   :  { %1205 = vmatprep.subr.bf16.mxu1 %v1204_v12 }
 0x11a   :  { %1207 = vmatpush3.bf16.msra.mxu1 %v1204_v12 }
 0x11b   :  { %1209 = vmatprep.subr.bf16.mxu1 %v1208_v15 }
 0x11e   :  { %1211 = vmatpush3.bf16.msra.mxu1 %v1208_v15 }
 0x1d4   :  { %v966_v42 = vpop.f32.mrb[0].mxu1 }
 0x1d5   :  { %v280_v43 = vadd.f32 %v966_v42, %v800_v41  ;;  %v274_v44 = vpop.f32.mrb[1].mxu1 }
 0x1d6   :  { %v275_v45 = vadd.f32 %v800_v41, %v274_v44 }
 0x1d7   :  { %v322_v46 = vmul.f32 0.2, %v280_v43  ;;  %vm314_vm1 = vcmp.ge.f32.partialorder %v280_v43, 0.0 }
 0x1d8   :  { %v321_v47 = vmul.f32 0.2, %v275_v45  ;;  %v969_v48 = vpop.f32.mrb[2].mxu1  ;;  %vm313_vm2 = vcmp.ge.f32.partialorder %v275_v45, 0.0 }
 0x1d9   :  { %v290_v49 = vadd.f32 %v969_v48, %v800_v41  ;;  %v284_v50 = vpop.f32.mrb[3].mxu1  ;;  %v330_v53 = vsel %vm314_vm1, %v280_v43, %v322_v46 }
 0x1da   :  { %v285_v51 = vadd.f32 %v800_v41, %v284_v50  ;;  %v329_v52 = vsel %vm313_vm2, %v275_v45, %v321_v47 }
 0x1db   :  { %v324_v54 = vmul.f32 0.2, %v290_v49  ;;  %1008 = vmatprep.mubr.f32.mxu0 %v329_v52  ;;  %vm316_vm4 = vcmp.ge.f32.partialorder %v290_v49, 0.0 }
 0x1dc   :  { %v323_v55 = vmul.f32 0.2, %v285_v51  ;;  %v972_v56 = vpop.f32.mrb[4].mxu1  ;;  %1009 = vmatmul.mubr.f32.vlgmr.msra.gmra.mrb[8].mxu0 %v330_v53  ;;  %vm315_vm3 = vcmp.ge.f32.partialorder %v285_v51, 0.0 }
 0x1dd   :  { %v300_v57 = vadd.f32 %v972_v56, %v800_v41  ;;  %v294_v58 = vpop.f32.mrb[5].mxu1  ;;  %v332_v62 = vsel %vm316_vm4, %v290_v49, %v324_v54  ;;  %1215 = vmatpush3.bf16.msra.mxu0 %v1212_v19 }
 0x1de   :  { %v295_v59 = vadd.f32 %v800_v41, %v294_v58  ;;  %v331_v60 = vsel %vm315_vm3, %v285_v51, %v323_v55  ;;  %1217 = vmatprep.subr.bf16.mxu0 %v1216_v21 }
 0x1df   :  { %v326_v61 = vmul.f32 0.2, %v300_v57  ;;  %1011 = vmatprep.mubr.f32.mxu0 %v331_v60  ;;  %vm318_vm6 = vcmp.ge.f32.partialorder %v300_v57, 0.0 }
 0x1e0   :  { %v325_v63 = vmul.f32 0.2, %v295_v59  ;;  %v975_v0 = vpop.f32.mrb[6].mxu1  ;;  %1012 = vmatmul.mubr.f32.gmra.mrb[10].mxu0 %v332_v62  ;;  %vm317_vm5 = vcmp.ge.f32.partialorder %v295_v59, 0.0 }
 0x1e1   :  { %v310_v1 = vadd.f32 %v975_v0, %v800_v41  ;;  %v304_v2 = vpop.f32.mrb[7].mxu1  ;;  %v334_v6 = vsel %vm318_vm6, %v300_v57, %v326_v61  ;;  %1219 = vmatpush3.bf16.msra.mxu0 %v1216_v21 }
 0x1e2   :  { %v305_v3 = vadd.f32 %v800_v41, %v304_v2  ;;  %v333_v4 = vsel %vm317_vm5, %v295_v59, %v325_v63  ;;  %1221 = vmatprep.subr.bf16.mxu0 %v1220_v24 }
 0x1e3   :  { %v328_v5 = vmul.f32 0.2, %v310_v1  ;;  %1014 = vmatprep.mubr.f32.mxu0 %v333_v4  ;;  %vm320_vm8 = vcmp.ge.f32.partialorder %v310_v1, 0.0  ;;  %v653_v4 = vld [vmem:[#allocation2 + $0x1e8] sm:$0xff] }
 0x1e4   :  { %v327_v7 = vmul.f32 0.2, %v305_v3  ;;  %1015 = vmatmul.mubr.f32.gmra.mrb[12].mxu0 %v334_v6  ;;  %vm319_vm7 = vcmp.ge.f32.partialorder %v305_v3, 0.0  ;;  %v654_v6 = vld [vmem:[#allocation2 + $0x1f0] sm:$0xff] }
 0x1e5   :  { %v336_v9 = vsel %vm320_vm8, %v310_v1, %v328_v5  ;;  %1223 = vmatpush3.bf16.msra.mxu0 %v1220_v24 }
 0x1e6   :  { %v335_v8 = vsel %vm319_vm7, %v305_v3, %v327_v7  ;;  %1225 = vmatprep.subr.bf16.mxu0 %v1224_v27  ;;  %v652_v3 = vld [vmem:[#allocation2 + $0x1e0] sm:$0xff]  ;;  %v655_v7 = vld [vmem:[#allocation2 + $0x1f8] sm:$0xff] }
 0x1e7   :  { %1017 = vmatprep.mubr.f32.mxu0 %v335_v8  ;;  %v1236_v5 = vpack.c.bf16 %v653_v4, %v652_v3  ;;  %v1240_v8 = vpack.c.bf16 %v655_v7, %v654_v6 }
 0x1e8   :  { %1018 = vmatmul.mubr.f32.gmra.mrb[14].mxu0 %v336_v9  ;;  %v802_v9 = vld [vmem:[%s1433_s3 + $0x3] ss:$0 sm:$0xff] }
 0x1e9   :  { %1227 = vmatpush3.bf16.msra.mxu0 %v1224_v27 }
 0x1ea   :  { %1229 = vmatprep.subr.bf16.mxu0 %v1228_v30 }
 0x1ed   :  { %1231 = vmatpush3.bf16.msra.mxu0 %v1228_v30 }
 0x1ee   :  { %1233 = vmatprep.subr.bf16.mxu0 %v1232_v33 }
 0x1f1   :  { %1235 = vmatpush3.bf16.msra.mxu0 %v1232_v33 }
 0x1f2   :  { %1237 = vmatprep.subr.bf16.mxu0 %v1236_v5 }
 0x1f5   :  { %1239 = vmatpush3.bf16.msra.mxu0 %v1236_v5 }
 0x1f6   :  { %1241 = vmatprep.subr.bf16.mxu0 %v1240_v8 }
 0x1f9   :  { %1243 = vmatpush3.bf16.msra.mxu0 %v1240_v8 }
 0x2af   :  { %v1010_v35 = vpop.f32.mrb[8].mxu0 }
 0x2b0   :  { %v431_v36 = vadd.f32 %v1010_v35, %v801_v34  ;;  %v425_v37 = vpop.f32.mrb[9].mxu0 }
 0x2b1   :  { %v426_v38 = vadd.f32 %v801_v34, %v425_v37 }
 0x2b2   :  { %v473_v39 = vmul.f32 0.2, %v431_v36  ;;  %vm465_vm9 = vcmp.ge.f32.partialorder %v431_v36, 0.0 }
 0x2b3   :  { %v472_v40 = vmul.f32 0.2, %v426_v38  ;;  %v1013_v41 = vpop.f32.mrb[10].mxu0  ;;  %vm464_vm10 = vcmp.ge.f32.partialorder %v426_v38, 0.0 }
 0x2b4   :  { %v441_v42 = vadd.f32 %v1013_v41, %v801_v34  ;;  %v435_v43 = vpop.f32.mrb[11].mxu0  ;;  %v481_v46 = vsel %vm465_vm9, %v431_v36, %v473_v39 }
 0x2b5   :  { %v436_v44 = vadd.f32 %v801_v34, %v435_v43  ;;  %v480_v45 = vsel %vm464_vm10, %v426_v38, %v472_v40 }
 0x2b6   :  { %v475_v47 = vmul.f32 0.2, %v441_v42  ;;  %1052 = vmatprep.mubr.f32.mxu1 %v480_v45  ;;  %vm467_vm12 = vcmp.ge.f32.partialorder %v441_v42, 0.0 }
 0x2b7   :  { %v474_v48 = vmul.f32 0.2, %v436_v44  ;;  %v1016_v49 = vpop.f32.mrb[12].mxu0  ;;  %1053 = vmatmul.mubr.f32.vlgmr.msra.gmra.mrb[8].mxu1 %v481_v46  ;;  %vm466_vm11 = vcmp.ge.f32.partialorder %v436_v44, 0.0 }
 0x2b8   :  { %v451_v50 = vadd.f32 %v1016_v49, %v801_v34  ;;  %v445_v51 = vpop.f32.mrb[13].mxu0  ;;  %v483_v55 = vsel %vm467_vm12, %v441_v42, %v475_v47  ;;  %v803_v42 = vld [vmem:[%s1433_s3 + $0x4] ss:$0 sm:$0xff]  ;;  %s1286_s3 = scalar_lea.vmem %s780_s2, 1024 }
 0x2b9   :  { %v446_v52 = vadd.f32 %v801_v34, %v445_v51  ;;  %v482_v53 = vsel %vm466_vm11, %v436_v44, %v474_v48  ;;  %p1287_p8 = scmp.ne.s32.totalorder %s780_s2, %s1286_s3  ;;  %p1292_p10 = scmp.lt.s32.totalorder %s1286_s3, %s1286_s3 }
 0x2ba   :  { %v477_v54 = vmul.f32 0.2, %v451_v50  ;;  %1055 = vmatprep.mubr.f32.mxu1 %v482_v53  ;;  %vm469_vm14 = vcmp.ge.f32.partialorder %v451_v50, 0.0 }
 0x2bb   :  { %v476_v56 = vmul.f32 0.2, %v446_v52  ;;  %v1019_v57 = vpop.f32.mrb[14].mxu0  ;;  %1056 = vmatmul.mubr.f32.gmra.mrb[10].mxu1 %v483_v55  ;;  %vm468_vm13 = vcmp.ge.f32.partialorder %v446_v52, 0.0  ;;  %p1293_p11 = por %p1292_p10, %p1291_p9 }
 0x2bc   :  { %v461_v58 = vadd.f32 %v1019_v57, %v801_v34  ;;  %v455_v59 = vpop.f32.mrb[15].mxu0  ;;  %v485_v63 = vsel %vm469_vm14, %v451_v50, %v477_v54 }
 0x2bd   :  { %v456_v60 = vadd.f32 %v801_v34, %v455_v59  ;;  %v484_v61 = vsel %vm468_vm13, %v446_v52, %v476_v56  ;;  %p1294_p12 = pnand %p1293_p11, %p1287_p8 }
 0x2be   :  { %v479_v62 = vmul.f32 0.2, %v461_v58  ;;  %1058 = vmatprep.mubr.f32.mxu1 %v484_v61  ;;  %vm471_vm0 = vcmp.ge.f32.partialorder %v461_v58, 0.0 }
 0x2bf   :  { %v478_v0 = vmul.f32 0.2, %v456_v60  ;;  %1059 = vmatmul.mubr.f32.gmra.mrb[12].mxu1 %v485_v63  ;;  %vm470_vm15 = vcmp.ge.f32.partialorder %v456_v60, 0.0 }
 0x2c0   :  { %v487_v2 = vsel %vm471_vm0, %v461_v58, %v479_v62 }
 0x2c1   :  { %v486_v1 = vsel %vm470_vm15, %v456_v60, %v478_v0 }
 0x2c2   :  { %1061 = vmatprep.mubr.f32.mxu1 %v486_v1 }
 0x2c3   :  { %1062 = vmatmul.mubr.f32.gmra.mrb[14].mxu1 %v487_v2 }
 0x38a   :  { %v1054_v10 = vpop.f32.mrb[8].mxu1 }
 0x38b   :  { %v582_v11 = vadd.f32 %v1054_v10, %v802_v9  ;;  %v576_v12 = vpop.f32.mrb[9].mxu1 }
 0x38c   :  { %v577_v13 = vadd.f32 %v802_v9, %v576_v12 }
 0x38d   :  { %v624_v14 = vmul.f32 0.2, %v582_v11  ;;  %vm616_vm1 = vcmp.ge.f32.partialorder %v582_v11, 0.0 }
 0x38e   :  { %v623_v15 = vmul.f32 0.2, %v577_v13  ;;  %v1057_v16 = vpop.f32.mrb[10].mxu1  ;;  %vm615_vm2 = vcmp.ge.f32.partialorder %v577_v13, 0.0 }
 0x38f   :  { %v592_v17 = vadd.f32 %v1057_v16, %v802_v9  ;;  %v586_v18 = vpop.f32.mrb[11].mxu1  ;;  %v632_v21 = vsel %vm616_vm1, %v582_v11, %v624_v14 }
 0x390   :  { %v587_v19 = vadd.f32 %v802_v9, %v586_v18  ;;  %v631_v20 = vsel %vm615_vm2, %v577_v13, %v623_v15 }
 0x391   :  { %v626_v22 = vmul.f32 0.2, %v592_v17  ;;  %1096 = vmatprep.mubr.f32.mxu0 %v631_v20  ;;  %vm618_vm4 = vcmp.ge.f32.partialorder %v592_v17, 0.0 }
 0x392   :  { %v625_v23 = vmul.f32 0.2, %v587_v19  ;;  %v1060_v24 = vpop.f32.mrb[12].mxu1  ;;  %1097 = vmatmul.mubr.f32.vlgmr.msra.gmra.mrb[16].mxu0 %v632_v21  ;;  %vm617_vm3 = vcmp.ge.f32.partialorder %v587_v19, 0.0 }
 0x393   :  { %v602_v25 = vadd.f32 %v1060_v24, %v802_v9  ;;  %v596_v26 = vpop.f32.mrb[13].mxu1  ;;  %v634_v30 = vsel %vm618_vm4, %v592_v17, %v626_v22 }
 0x394   :  { %v597_v27 = vadd.f32 %v802_v9, %v596_v26  ;;  %v633_v28 = vsel %vm617_vm3, %v587_v19, %v625_v23 }
 0x395   :  { %v628_v29 = vmul.f32 0.2, %v602_v25  ;;  %1099 = vmatprep.mubr.f32.mxu0 %v633_v28  ;;  %vm620_vm6 = vcmp.ge.f32.partialorder %v602_v25, 0.0 }
 0x396   :  { %v627_v31 = vmul.f32 0.2, %v597_v27  ;;  %v1063_v32 = vpop.f32.mrb[14].mxu1  ;;  %1100 = vmatmul.mubr.f32.gmra.mrb[18].mxu0 %v634_v30  ;;  %vm619_vm5 = vcmp.ge.f32.partialorder %v597_v27, 0.0 }
 0x397   :  { %v612_v33 = vadd.f32 %v1063_v32, %v802_v9  ;;  %v606_v34 = vpop.f32.mrb[15].mxu1  ;;  %v636_v38 = vsel %vm620_vm6, %v602_v25, %v628_v29 }
 0x398   :  { %v607_v35 = vadd.f32 %v802_v9, %v606_v34  ;;  %v635_v36 = vsel %vm619_vm5, %v597_v27, %v627_v31 }
 0x399   :  { %v630_v37 = vmul.f32 0.2, %v612_v33  ;;  %1102 = vmatprep.mubr.f32.mxu0 %v635_v36  ;;  %vm622_vm8 = vcmp.ge.f32.partialorder %v612_v33, 0.0 }
 0x39a   :  { %v629_v39 = vmul.f32 0.2, %v607_v35  ;;  %1103 = vmatmul.mubr.f32.gmra.mrb[20].mxu0 %v636_v38  ;;  %vm621_vm7 = vcmp.ge.f32.partialorder %v607_v35, 0.0 }
 0x39b   :  { %v638_v41 = vsel %vm622_vm8, %v612_v33, %v630_v37 }
 0x39c   :  { %v637_v40 = vsel %vm621_vm7, %v607_v35, %v629_v39 }
 0x39d   :  { %1105 = vmatprep.mubr.f32.mxu0 %v637_v40 }
 0x39e   :  { %1106 = vmatmul.mubr.f32.gmra.mrb[22].mxu0 %v638_v41 }
 0x465   :  { %v1098_v43 = vpop.f32.mrb[16].mxu0 }
 0x466   :  { %v733_v44 = vadd.f32 %v1098_v43, %v803_v42  ;;  %v727_v45 = vpop.f32.mrb[17].mxu0 }
 0x467   :  { %v728_v46 = vadd.f32 %v803_v42, %v727_v45 }
 0x468   :  { %767 = vst [vmem:[#allocation5 + $0x8] sm:$0xff] %v733_v44 }
 0x469   :  { %766 = vst [vmem:[#allocation5] sm:$0xff] %v728_v46  ;;  %v1101_v47 = vpop.f32.mrb[18].mxu0 }
 0x46a   :  { %v743_v48 = vadd.f32 %v1101_v47, %v803_v42  ;;  %v737_v49 = vpop.f32.mrb[19].mxu0 }
 0x46b   :  { %v738_v50 = vadd.f32 %v803_v42, %v737_v49 }
 0x46c   :  { %769 = vst [vmem:[#allocation5 + $0x18] sm:$0xff] %v743_v48 }
 0x46d   :  { %768 = vst [vmem:[#allocation5 + $0x10] sm:$0xff] %v738_v50  ;;  %v1104_v51 = vpop.f32.mrb[20].mxu0 }
 0x46e   :  { %v753_v52 = vadd.f32 %v1104_v51, %v803_v42  ;;  %v747_v53 = vpop.f32.mrb[21].mxu0 }
 0x46f   :  { %v748_v54 = vadd.f32 %v803_v42, %v747_v53 }
 0x470   :  { %771 = vst [vmem:[#allocation5 + $0x28] sm:$0xff] %v753_v52 }
 0x471   :  { %770 = vst [vmem:[#allocation5 + $0x20] sm:$0xff] %v748_v54  ;;  %v1107_v55 = vpop.f32.mrb[22].mxu0 }
 0x472   :  { %v763_v56 = vadd.f32 %v1107_v55, %v803_v42  ;;  %v757_v57 = vpop.f32.mrb[23].mxu0 }
 0x473   :  { %v758_v58 = vadd.f32 %v803_v42, %v757_v57 }
 0x474   :  { %773 = vst [vmem:[#allocation5 + $0x38] sm:$0xff] %v763_v56 }
 0x475   :  { %772 = vst [vmem:[#allocation5 + $0x30] sm:$0xff] %v758_v58 }
 0x476   :  { %1297 = shalt.err (!%p1294_p12)
}
 0x477   :  { %s1298_s12 = scalar_lea.hbm %s1434_s4, 1024 }
 0x478   :  { %p1299_p13 = scmp.ne.s32.totalorder %s1434_s4, %s1298_s12  ;;  %p1302_p0 = scmp.lt.u32.totalorder %s1298_s12, %s1434_s4 }
 0x47a   :  { %p1304_p1 = pnand %p1302_p0, %p1299_p13 }
 0x47c   :  { %1307 = shalt.err (!%p1304_p1)
}
 0x47d   :  { %785 = dma.vmem_to_hbm [thread:$0]  %s780_s2, 1024, %s1434_s4, [#allocation4], %s1313_s25, %s1313_s25, %s1314_s26  }
 0x47e   :  { %1310 = dma.done.wait [#allocation4], 1024  }
 0x47f   :  { %1311 = vsyncadd [#allocation4], 4294966272 }
 0x480   :  { %789 = vsyncpa [#allocation3], 1 }
 0x481   :  { %790 = vsyncpa [#allocation4], 1 }

</bundles_post_ra>
